<compile_context>
chip_gen: v7x
topology: tpu7x:2x2x1
jax: 0.10.0
libtpu: 0.0.40
codegen_flags: <defaults>
</compile_context>

<pallas_src>
import functools

import jax
import jax.numpy as jnp
from jax.experimental import pallas as pl
from jax.experimental.pallas import tpu as pltpu


# ----------------------------------------------------------------------------
# Kernel
# ----------------------------------------------------------------------------
def _attn_score_softmax_kernel(h_ref, e_ref, o_ref, acc_ref):
    """Grid = (L_tiles, H_tiles). The innermost ('arbitrary') H axis accumulates
    the per-(b,l) dot products; the last H step applies the legacy softmax over
    the BATCH axis (dim=0) and stores a lane-dense (B, 1, TL) block."""
    hj = pl.program_id(1)

    @pl.when(hj == 0)
    def _init():
        acc_ref[...] = jnp.zeros_like(acc_ref)

    # M=1 batched matmul -> MXU (idle otherwise). Keeps XLU/VPU free, avoids the
    # cross-lane reduce + relayout, and accumulates in f32.
    q = h_ref[...].astype(e_ref.dtype)          # (B, 1, TH)
    enc = e_ref[...]                            # (B, TL, TH)
    acc_ref[...] += jnp.einsum(
        "bqh,blh->bql", q, enc, preferred_element_type=jnp.float32)

    @pl.when(hj == pl.num_programs(1) - 1)
    def _finalize():
        energy = acc_ref[...]                   # (B, 1, TL) f32
        # Legacy F.softmax with no dim on a 3-D tensor == softmax over dim 0
        # (batch). Tiles never split B, so this is exact per tile.
        m = jnp.max(energy, axis=0, keepdims=True)
        ex = jnp.exp(energy - m)
        denom = jnp.sum(ex, axis=0, keepdims=True)
        # Exact divide; pl.reciprocal(denom, approx=True) would use the EUP slot
        # but breaks the 1e-5 bit-tight comparison against the f32 reference.
        o_ref[...] = (ex / denom).astype(o_ref.dtype)


# ----------------------------------------------------------------------------
# Tiling / budgets
# ----------------------------------------------------------------------------
def _round_up(x, m):
    return ((x + m - 1) // m) * m


def _vmem_budgets():
    """Generation-aware VMEM budgets (v5e/v6e: 128 MiB physical, v7x: 64 MiB)."""
    cap = 64 * 1024 * 1024
    try:
        cap = int(getattr(pltpu.get_tpu_info(), "vmem_capacity_bytes", cap) or cap)
    except Exception:
        pass
    vmem_limit = min((cap * 3) // 4, 96 * 1024 * 1024)   # 96 MiB v5e/v6e, 48 MiB v7x
    per_buffer = max(2 * 1024 * 1024, vmem_limit // 4)   # enc is double-buffered
    return per_buffer, vmem_limit


def _choose_tiles(B, L, H, itemsize, per_buffer_budget):
    """Pick (TL, TH, l_pad, h_pad). Prefer full H (single reduction step); tile H
    only when even a 128-row L-tile would not fit the per-buffer budget."""
    l128 = _round_up(L, 128)
    max_tl = per_buffer_budget // max(1, B * H * itemsize)
    if max_tl >= 128:
        tl = min((max_tl // 128) * 128, l128)
        th = H
    else:
        tl = 128
        max_th = per_buffer_budget // max(1, B * tl * itemsize)
        th = max(128, (max_th // 128) * 128)
        th = min(th, _round_up(H, 128))
    # v7x megacore: keep >=2 L-tiles when possible so the "parallel" axis has
    # work to shard across the two TensorCores.
    if _round_up(L, tl) == tl and l128 >= 256:
        tl = max(128, ((l128 // 2) // 128) * 128)
    l_pad = _round_up(L, tl)
    h_pad = H if th == H else _round_up(H, th)
    return tl, th, l_pad, h_pad


# ----------------------------------------------------------------------------
# Wrappers
# ----------------------------------------------------------------------------
def _softmaxed_dot(q3, enc, stream_bf16):
    """q3: (B, 1, H), enc: (B, L, H) -> softmax-over-batch of per-(b,l) dots, (B, 1, L)."""
    B, _, H = q3.shape
    L = enc.shape[1]

    if stream_bf16:
        # Halves streamed HBM bytes (kernel is ~0.5 flop/byte, HBM-bound). The
        # f32 accumulate + softmax stay exact, but results are no longer
        # bit-tight vs. an all-f32 reference -- hence opt-in.
        enc = enc.astype(jnp.bfloat16)
    itemsize = jnp.dtype(enc.dtype).itemsize

    per_buffer, vmem_limit = _vmem_budgets()

    # B cannot be tiled (the softmax reduces over batch). If even a minimal
    # (B, 128, 128) tile does not fit the per-buffer budget, fall back to XLA.
    if B * 128 * 128 * itemsize > per_buffer:
        # TODO(synk): a cross-tile two-pass batch softmax would lift this limit.
        energy = jnp.einsum("bqh,blh->bql", q3.astype(jnp.float32),
                            enc.astype(jnp.float32))
        return jax.nn.softmax(energy, axis=0)

    tl, th, l_pad, h_pad = _choose_tiles(B, L, H, itemsize, per_buffer)

    if l_pad != L:
        # Zero-padded columns softmax among themselves (per-column over B),
        # never affect real columns, and are sliced off below.
        enc = jnp.pad(enc, ((0, 0), (0, l_pad - L), (0, 0)))
    if h_pad != H:
        # Zero-padded H contributes nothing to the dot products.
        enc = jnp.pad(enc, ((0, 0), (0, 0), (0, h_pad - H)))
        q3 = jnp.pad(q3, ((0, 0), (0, 0), (0, h_pad - H)))

    out = pl.pallas_call(
        _attn_score_softmax_kernel,
        out_shape=jax.ShapeDtypeStruct((B, 1, l_pad), jnp.float32),
        grid_spec=pltpu.PrefetchScalarGridSpec(
            num_scalar_prefetch=0,
            grid=(l_pad // tl, h_pad // th),
            in_specs=[
                pl.BlockSpec((B, 1, th), lambda i, hj: (0, 0, hj)),   # hidden (tiny)
                pl.BlockSpec((B, tl, th), lambda i, hj: (0, i, hj)),  # enc (streamed)
            ],
            out_specs=pl.BlockSpec((B, 1, tl), lambda i, hj: (0, 0, i)),  # lane-dense
            scratch_shapes=[pltpu.VMEM((B, 1, tl), jnp.float32)],
        ),
        compiler_params=pltpu.CompilerParams(
            dimension_semantics=("parallel", "arbitrary"),
            vmem_limit_bytes=int(vmem_limit),
        ),
    )(q3, enc)
    return out[:, :, :L]


@functools.partial(jax.jit, static_argnames=("method", "stream_bf16"))
def attn_forward(hidden, encoder_outputs, w_general=None, method="dot",
                 stream_bf16=False):
    """hidden: (B, 1, H) f32, encoder_outputs: (B, L, H) f32 -> (B, 1, L) f32."""
    B, _, H = hidden.shape
    q3 = hidden
    if method == "general":
        # energy[b,l] = <hidden[b] @ W, enc[b,l]> -- project once (O(B*H^2)) and
        # reuse the streamed dot kernel. One-shot tiny matmul -> plain XLA dot
        # (a Pallas call here only adds an untiled-(H,H)-in-VMEM failure mode).
        q3 = jnp.dot(hidden.reshape(B, H), w_general).reshape(B, 1, H)
    elif method != "dot":
        # TODO(synk): method='concat' (Linear(2H->H) + learned v) not implemented.
        raise NotImplementedError(method)
    return _softmaxed_dot(q3, encoder_outputs, stream_bf16)


def _reference(hidden, encoder_outputs, w_general=None, method="dot"):
    """Pure-jnp reference mirroring the PyTorch code (legacy softmax dim=0)."""
    if method == "dot":
        energy = jnp.einsum("bqh,blh->bql", hidden, encoder_outputs)
    else:  # general
        proj = jnp.einsum("blh,kh->blk", encoder_outputs, w_general)   # nn.Linear: x @ W.T
        energy = jnp.einsum("bqh,blh->bql", hidden, proj)
    return jax.nn.softmax(energy, axis=0)


# ----------------------------------------------------------------------------
# Main
# ----------------------------------------------------------------------------
if __name__ == "__main__":
    B, L, H = 2, 8, 32  # batch, encoder seq len, hidden_size

    key = jax.random.PRNGKey(0)
    k1, k2, k3 = jax.random.split(key, 3)
    hidden = jax.random.normal(k1, (B, 1, H), dtype=jnp.float32)
    encoder_outputs = jax.random.normal(k2, (B, L, H), dtype=jnp.float32)
    # Deterministic weight for the 'general' variant (nn.Linear(H, H, bias=False)).
    w_general = (jax.random.normal(k3, (H, H), dtype=jnp.float32)
                 * (1.0 / jnp.sqrt(H)))

    # method='dot' (module default)
    out_dot = attn_forward(hidden, encoder_outputs, method="dot")
    jax.block_until_ready(out_dot)
    ref_dot = _reference(hidden, encoder_outputs, method="dot")
    assert out_dot.shape == (B, 1, L)
    assert jnp.allclose(out_dot, ref_dot, atol=1e-5, rtol=1e-5)

    # method='general'
    out_gen = attn_forward(hidden, encoder_outputs, w_general, method="general")
    jax.block_until_ready(out_gen)
    ref_gen = _reference(hidden, encoder_outputs, w_general, method="general")
    assert out_gen.shape == (B, 1, L)
    assert jnp.allclose(out_gen, ref_gen, atol=1e-5, rtol=1e-5)

    # bf16-streaming fast path (halves HBM bytes); looser tolerance vs f32 ref.
    out_bf16 = attn_forward(hidden, encoder_outputs, method="dot", stream_bf16=True)
    jax.block_until_ready(out_bf16)
    assert out_bf16.shape == (B, 1, L)
    assert bool(jnp.all(jnp.isfinite(out_bf16)))
    assert jnp.allclose(out_bf16, ref_dot, atol=5e-2)

    print("KERNEL_OK")
</pallas_src>

<mosaic_0001>
module attributes {stable_mosaic.version = 11 : i64} {
  func.func @_attn_score_softmax_kernel(%arg0: i32, %arg1: i32, %arg2: memref<2x1x32xf32, #tpu.memory_space<vmem>>, %arg3: memref<2x128x32xf32, #tpu.memory_space<vmem>>, %arg4: memref<2x1x128xf32, #tpu.memory_space<vmem>>, %arg5: memref<2x1x128xf32, #tpu.memory_space<vmem>>) attributes {dimension_semantics = [#tpu.dimension_semantics<parallel>, #tpu.dimension_semantics<arbitrary>], iteration_bounds = array<i64: 1, 1>, scalar_prefetch = 0 : i64, scratch_operands = 1 : i64, tpu.core_type = #tpu.core_type<tc>, window_params = [{transform_indices = @transform_0, window_bounds = array<i64: 2, 1, 32>}, {transform_indices = @transform_1, window_bounds = array<i64: 2, 128, 32>}, {transform_indices = @transform_2, window_bounds = array<i64: 2, 1, 128>}]} {
    %c0_i32 = arith.constant 0 : i32
    %0 = arith.cmpi eq, %arg1, %c0_i32 : i32
    %1 = arith.extui %0 : i1 to i32
    %c0_i32_0 = arith.constant 0 : i32
    %2 = arith.cmpi ne, %1, %c0_i32_0 : i32
    scf.if %2 {
      %cst_14 = arith.constant 0.000000e+00 : f32
      %12 = vector.broadcast %cst_14 : f32 to vector<2x1x128xf32>
      %c0_15 = arith.constant 0 : index
      %c0_16 = arith.constant 0 : index
      %c0_17 = arith.constant 0 : index
      %13 = vector.load %arg5[%c0_15, %c0_16, %c0_17] : memref<2x1x128xf32, #tpu.memory_space<vmem>>, vector<2x1x128xf32>
      tpu.vector_store %arg5[%c0_15, %c0_16, %c0_17], %12 {strides = array<i32>} : memref<2x1x128xf32, #tpu.memory_space<vmem>>, vector<2x1x128xf32>,
    } else {
    }
    %c0 = arith.constant 0 : index
    %c0_1 = arith.constant 0 : index
    %c0_2 = arith.constant 0 : index
    %3 = vector.load %arg2[%c0, %c0_1, %c0_2] : memref<2x1x32xf32, #tpu.memory_space<vmem>>, vector<2x1x32xf32>
    %c0_3 = arith.constant 0 : index
    %c0_4 = arith.constant 0 : index
    %c0_5 = arith.constant 0 : index
    %4 = vector.load %arg3[%c0_3, %c0_4, %c0_5] : memref<2x128x32xf32, #tpu.memory_space<vmem>>, vector<2x128x32xf32>
    %c0_6 = arith.constant 0 : index
    %c0_7 = arith.constant 0 : index
    %c0_8 = arith.constant 0 : index
    %5 = vector.load %arg5[%c0_6, %c0_7, %c0_8] : memref<2x1x128xf32, #tpu.memory_space<vmem>>, vector<2x1x128xf32>
    "tpu.trace_start"() <{level = 10 : i32, message = "bqh,blh->bql"}> : () -> ()
    %cst = arith.constant dense<0.000000e+00> : vector<2x1x128xf32>
    %6 = tpu.matmul %3, %4, %cst {dimension_numbers = #tpu.dot_dimension_numbers<[2], [2], [1], [1], [0, 0, 0, 1, 1, 1], [0], [0]>} : vector<2x1x32xf32>, vector<2x128x32xf32>, vector<2x1x128xf32> -> vector<2x1x128xf32>
    "tpu.trace_stop"() : () -> ()
    %7 = arith.addf %5, %6 : vector<2x1x128xf32>
    %c0_9 = arith.constant 0 : index
    %c0_10 = arith.constant 0 : index
    %c0_11 = arith.constant 0 : index
    %8 = vector.load %arg5[%c0_9, %c0_10, %c0_11] : memref<2x1x128xf32, #tpu.memory_space<vmem>>, vector<2x1x128xf32>
    tpu.vector_store %arg5[%c0_9, %c0_10, %c0_11], %7 {strides = array<i32>} : memref<2x1x128xf32, #tpu.memory_space<vmem>>, vector<2x1x128xf32>,
    %c0_i32_12 = arith.constant 0 : i32
    %9 = arith.cmpi eq, %arg1, %c0_i32_12 : i32
    %10 = arith.extui %9 : i1 to i32
    %c0_i32_13 = arith.constant 0 : i32
    %11 = arith.cmpi ne, %10, %c0_i32_13 : i32
    scf.if %11 {
      %c0_14 = arith.constant 0 : index
      %c0_15 = arith.constant 0 : index
      %c0_16 = arith.constant 0 : index
      %12 = vector.load %arg5[%c0_14, %c0_15, %c0_16] : memref<2x1x128xf32, #tpu.memory_space<vmem>>, vector<2x1x128xf32>
      %cst_17 = arith.constant dense<0xFF800000> : vector<1x128xf32>
      %13 = vector.multi_reduction <maximumf>, %12, %cst_17 [0] : vector<2x1x128xf32> to vector<1x128xf32>
      %14 = vector.shape_cast %13 : vector<1x128xf32> to vector<1x1x128xf32>
      %15 = vector.broadcast %14 : vector<1x1x128xf32> to vector<2x1x128xf32>
      %16 = arith.subf %12, %15 : vector<2x1x128xf32>
      %17 = math.exp %16 : vector<2x1x128xf32>
      %cst_18 = arith.constant dense<0.000000e+00> : vector<1x128xf32>
      %18 = vector.multi_reduction <add>, %17, %cst_18 [0] : vector<2x1x128xf32> to vector<1x128xf32>
      %19 = vector.shape_cast %18 : vector<1x128xf32> to vector<1x1x128xf32>
      %20 = vector.broadcast %19 : vector<1x1x128xf32> to vector<2x1x128xf32>
      %21 = arith.divf %17, %20 : vector<2x1x128xf32>
      %c0_19 = arith.constant 0 : index
      %c0_20 = arith.constant 0 : index
      %c0_21 = arith.constant 0 : index
      %22 = vector.load %arg4[%c0_19, %c0_20, %c0_21] : memref<2x1x128xf32, #tpu.memory_space<vmem>>, vector<2x1x128xf32>
      tpu.vector_store %arg4[%c0_19, %c0_20, %c0_21], %21 {strides = array<i32>} : memref<2x1x128xf32, #tpu.memory_space<vmem>>, vector<2x1x128xf32>,
    } else {
    }
    return
  }
  func.func @transform_0(%arg0: i32, %arg1: i32) -> (i32, i32, i32) {
    %c0_i32 = arith.constant 0 : i32
    %c0_i32_0 = arith.constant 0 : i32
    %c0_i32_1 = arith.constant 0 : i32
    return %c0_i32, %c0_i32_0, %arg1 : i32, i32, i32
  }
  func.func @transform_1(%arg0: i32, %arg1: i32) -> (i32, i32, i32) {
    %c0_i32 = arith.constant 0 : i32
    %c0_i32_0 = arith.constant 0 : i32
    return %c0_i32, %arg0, %arg1 : i32, i32, i32
  }
  func.func @transform_2(%arg0: i32, %arg1: i32) -> (i32, i32, i32) {
    %c0_i32 = arith.constant 0 : i32
    %c0_i32_0 = arith.constant 0 : i32
    %c0_i32_1 = arith.constant 0 : i32
    return %c0_i32, %c0_i32_0, %arg0 : i32, i32, i32
  }
}

</mosaic_0001>

<bundles_post_ra>
// kernel: attn_forward.1
= control target key start
LH: loop header
LB: loop body
LE: loop exit
PB: predicated region body
PF: predicated region fallthrough
CT: control target
= control target key end

     0   :  { %vm54_vm0 = vcmask 261120   ;;  %v582_v3 = vmov 0.0|0.0   ;;  %v583_v7 = vmov 0.0   ;;  %vm584_vm2 = vmmov 0   ;;  %s773_s0 = inlined_call_operand.vmem [shape: f32[2,1,32], index: 0, kind: input, shape index: {}]   ;;  %s774_s1 = inlined_call_operand.vmem [shape: f32[2,128,32], index: 1, kind: input, shape index: {}]   ;;  %s775_s2 = inlined_call_operand.hbm [shape: f32[2,1,128], index: 2, kind: output, shape index: {}]  }
   0x1   :  { %v20_v0 = vld [vmem:[%s774_s1] sm:$0xff]  ;;  %v21_v1 = vld [vmem:[%s774_s1 + $0x8] sm:$0xff]  ;;  %482 = vmatprep.subr.bf16.mxu0 %v582_v3  ;;  %514 = vmatprep.subr.bf16.mxu1 %v582_v3  ;;  %vm616_vm1 = vmpackc.low %vm54_vm0, %vm54_vm0  ;;  %16 = vst [vmem:[#allocation2] sm:$0x1] %v583_v7 }
   0x2   :  { %v36_v2 = vld [vmem:[%s774_s1 + $0x80] sm:$0xff]  ;;  %v483_v4 = vpack.c.bf16 %v21_v1, %v20_v0  ;;  %v37_v6 = vld [vmem:[%s774_s1 + $0x88] sm:$0xff]  ;;  %17 = vst [vmem:[#allocation2 + $0x1] sm:$0x1] %v583_v7  ;;  %444 = vmatprep.mubr.msk.f32.mxu0 %vm584_vm2, %v583_v7  ;;  %479 = vmatprep.mubr.msk.f32.mxu1 %vm584_vm2, %v583_v7  ;;  %v22_v9 = vld [vmem:[%s774_s1 + $0x10] sm:$0xff] }
   0x3   :  { %v515_v8 = vpack.c.bf16 %v37_v6, %v36_v2  ;;  %v23_v10 = vld [vmem:[%s774_s1 + $0x18] sm:$0xff]  ;;  %v38_v11 = vld [vmem:[%s774_s1 + $0x90] sm:$0xff]  ;;  %v24_v15 = vld [vmem:[%s774_s1 + $0x20] sm:$0xff] }
   0x4   :  { %485 = vmatpush3.bf16.xpose.msk.msra.mxu0 %vm616_vm1, %v483_v4  ;;  %v39_v12 = vld [vmem:[%s774_s1 + $0x98] sm:$0xff]  ;;  %v487_v13 = vpack.c.bf16 %v23_v10, %v22_v9  ;;  %v25_v16 = vld [vmem:[%s774_s1 + $0x28] sm:$0xff] }
   0x5   :  { %517 = vmatpush3.bf16.xpose.msk.msra.mxu1 %vm616_vm1, %v515_v8  ;;  %486 = vmatprep.subr.bf16.mxu0 %v582_v3  ;;  %v519_v14 = vpack.c.bf16 %v39_v12, %v38_v11 }
   0x6   :  { %518 = vmatprep.subr.bf16.mxu1 %v582_v3 }
   0xc   :  { %489 = vmatpush3.bf16.xpose.msk.msra.mxu0 %vm616_vm1, %v487_v13 }
   0xd   :  { %521 = vmatpush3.bf16.xpose.msk.msra.mxu1 %vm616_vm1, %v519_v14  ;;  %490 = vmatprep.subr.bf16.mxu0 %v582_v3 }
   0xe   :  { %7 = vsyncpa [#allocation4], 0  ;;  %522 = vmatprep.subr.bf16.mxu1 %v582_v3  ;;  %v40_v17 = vld [vmem:[%s774_s1 + $0xa0] sm:$0xff]  ;;  %v41_v18 = vld [vmem:[%s774_s1 + $0xa8] sm:$0xff]  ;;  %v491_v19 = vpack.c.bf16 %v25_v16, %v24_v15  ;;  %v306_v61 = vlaneseq  ;;  %vm319_vm4 = vcmask 1040384  }
   0xf   :  { %v523_v20 = vpack.c.bf16 %v41_v18, %v40_v17  ;;  %v26_v21 = vld [vmem:[%s774_s1 + $0x30] sm:$0xff]  ;;  %v27_v22 = vld [vmem:[%s774_s1 + $0x38] sm:$0xff]  ;;  %v28_v27 = vld [vmem:[%s774_s1 + $0x40] sm:$0xff] }
  0x10   :  { %v42_v23 = vld [vmem:[%s774_s1 + $0xb0] sm:$0xff]  ;;  %v43_v24 = vld [vmem:[%s774_s1 + $0xb8] sm:$0xff]  ;;  %v495_v25 = vpack.c.bf16 %v27_v22, %v26_v21  ;;  %v29_v28 = vld [vmem:[%s774_s1 + $0x48] sm:$0xff]  ;;  %vm308_vm3 = vcmp.lt.s32.totalorder %v306_v61, 128 }
  0x11   :  { %v527_v26 = vpack.c.bf16 %v43_v24, %v42_v23  ;;  %v44_v29 = vld [vmem:[%s774_s1 + $0xc0] sm:$0xff]  ;;  %v45_v30 = vld [vmem:[%s774_s1 + $0xc8] sm:$0xff]  ;;  %v499_v31 = vpack.c.bf16 %v29_v28, %v28_v27  ;;  %v30_v33 = vld [vmem:[%s774_s1 + $0x50] sm:$0xff] }
  0x12   :  { %v531_v32 = vpack.c.bf16 %v45_v30, %v44_v29  ;;  %v31_v34 = vld [vmem:[%s774_s1 + $0x58] sm:$0xff]  ;;  %v46_v35 = vld [vmem:[%s774_s1 + $0xd0] sm:$0xff]  ;;  %v32_v39 = vld [vmem:[%s774_s1 + $0x60] sm:$0xff] }
  0x13   :  { %v47_v36 = vld [vmem:[%s774_s1 + $0xd8] sm:$0xff]  ;;  %v503_v37 = vpack.c.bf16 %v31_v34, %v30_v33  ;;  %v33_v40 = vld [vmem:[%s774_s1 + $0x68] sm:$0xff]  ;;  %v48_v41 = vld [vmem:[%s774_s1 + $0xe0] sm:$0xff] }
  0x14   :  { %493 = vmatpush3.bf16.xpose.msk.msra.mxu0 %vm616_vm1, %v491_v19  ;;  %v535_v38 = vpack.c.bf16 %v47_v36, %v46_v35  ;;  %v49_v42 = vld [vmem:[%s774_s1 + $0xe8] sm:$0xff]  ;;  %v507_v43 = vpack.c.bf16 %v33_v40, %v32_v39  ;;  %v34_v45 = vld [vmem:[%s774_s1 + $0x70] sm:$0xff]  ;;  %v35_v46 = vld [vmem:[%s774_s1 + $0x78] sm:$0xff] }
  0x15   :  { %525 = vmatpush3.bf16.xpose.msk.msra.mxu1 %vm616_vm1, %v523_v20  ;;  %494 = vmatprep.subr.bf16.mxu0 %v582_v3  ;;  %v539_v44 = vpack.c.bf16 %v49_v42, %v48_v41  ;;  %v50_v47 = vld [vmem:[%s774_s1 + $0xf0] sm:$0xff]  ;;  %v51_v48 = vld [vmem:[%s774_s1 + $0xf8] sm:$0xff]  ;;  %v511_v49 = vpack.c.bf16 %v35_v46, %v34_v45  ;;  %v18_v51 = vld [vmem:[%s773_s0] sm:$0x1] }
  0x16   :  { %526 = vmatprep.subr.bf16.mxu1 %v582_v3  ;;  %v543_v50 = vpack.c.bf16 %v51_v48, %v50_v47  ;;  %v19_v52 = vld [vmem:[%s773_s0 + $0x1] sm:$0x1]  ;;  %v52_v53 = vld [vmem:[#allocation2] sm:$0x1]  ;;  %s585_s0 = smov [#allocation3]  }
  0x17   :  { %v53_v54 = vld [vmem:[#allocation2 + $0x1] sm:$0x1]  ;;  %s333_s1 = sshll.u32 %s585_s0, 4  ;;  %s334_s1 = int_to_ptr.vmem [resolvable:$true] %s333_s1 }
  0x18   :  { %s558_s21 = scalar_lea.vmem %s334_s1, 32  ;;  %p563_p1 = scmp.lt.s32.totalorder %s334_s1, %s334_s1 }
  0x19   :  { %p559_p0 = scmp.ne.s32.totalorder %s334_s1, %s558_s21  ;;  %p564_p2 = scmp.lt.s32.totalorder %s558_s21, %s558_s21 }
  0x1b   :  { %p565_p3 = por %p564_p2, %p563_p1 }
  0x1c   :  { %497 = vmatpush3.bf16.xpose.msk.msra.mxu0 %vm616_vm1, %v495_v25 }
  0x1d   :  { %529 = vmatpush3.bf16.xpose.msk.msra.mxu1 %vm616_vm1, %v527_v26  ;;  %498 = vmatprep.subr.bf16.mxu0 %v582_v3  ;;  %p566_p4 = pnand %p565_p3, %p559_p0 }
  0x1e   :  { %530 = vmatprep.subr.bf16.mxu1 %v582_v3 }
  0x24   :  { %501 = vmatpush3.bf16.xpose.msk.msra.mxu0 %vm616_vm1, %v499_v31 }
  0x25   :  { %533 = vmatpush3.bf16.xpose.msk.msra.mxu1 %vm616_vm1, %v531_v32  ;;  %502 = vmatprep.subr.bf16.mxu0 %v582_v3 }
  0x26   :  { %534 = vmatprep.subr.bf16.mxu1 %v582_v3 }
  0x2c   :  { %505 = vmatpush3.bf16.xpose.msk.msra.mxu0 %vm616_vm1, %v503_v37 }
  0x2d   :  { %537 = vmatpush3.bf16.xpose.msk.msra.mxu1 %vm616_vm1, %v535_v38  ;;  %506 = vmatprep.subr.bf16.mxu0 %v582_v3 }
  0x2e   :  { %538 = vmatprep.subr.bf16.mxu1 %v582_v3 }
  0x34   :  { %509 = vmatpush3.bf16.xpose.msk.msra.mxu0 %vm616_vm1, %v507_v43 }
  0x35   :  { %541 = vmatpush3.bf16.xpose.msk.msra.mxu1 %vm616_vm1, %v539_v44  ;;  %510 = vmatprep.subr.bf16.mxu0 %v582_v3 }
  0x36   :  { %542 = vmatprep.subr.bf16.mxu1 %v582_v3 }
  0x3c   :  { %513 = vmatpush3.bf16.xpose.msk.msra.mxu0 %vm616_vm1, %v511_v49 }
  0x3d   :  { %545 = vmatpush3.bf16.xpose.msk.msra.mxu1 %vm616_vm1, %v543_v50 }
  0x43   :  { %445 = vmatmul.mubr.msk.f32.vlgmr.msra.gmra.mrb[0].mxu0 %vm54_vm0, %v18_v51 }
  0x44   :  { %480 = vmatmul.mubr.msk.f32.vlgmr.msra.gmra.mrb[0].mxu1 %vm54_vm0, %v19_v52 }
 0x116   :  { %v172_v55 = vpop.f32.mrb[0].mxu0 }
 0x117   :  { %v297_v56 = vadd.f32 %v172_v55, %v52_v53  ;;  %v293_v57 = vpop.f32.mrb[0].mxu1  ;;  %v446_v58 = vpop.f32.mrb[1].mxu0 }
 0x118   :  { %v298_v59 = vadd.f32 %v293_v57, %v53_v54  ;;  %v481_v60 = vpop.f32.mrb[1].mxu1 }
 0x119   :  { %299 = vst [vmem:[#allocation2] sm:$0x1] %v297_v56 }
 0x11a   :  { %300 = vst [vmem:[#allocation2 + $0x1] sm:$0x1] %v298_v59 }
 0x120   :  { %v304_v62 = vld [vmem:[#allocation2] sm:$0x1] }
 0x121   :  { %v305_v63 = vld [vmem:[#allocation2 + $0x1] sm:$0x1]  ;;  %v310_v0 = vsel %vm308_vm3, %v304_v62, -inf }
 0x122   :  { %v311_v1 = vsel %vm308_vm3, %v305_v63, -inf }
 0x123   :  { %v312_v2 = vmax.f32 %v310_v0, %v311_v1 }
 0x125   :  { %v313_v3 = vsub.f32 %v304_v62, %v312_v2  ;;  %v314_v4 = vsub.f32 %v305_v63, %v312_v2 }
 0x127   :  { %v315_v5 = vmul.f32 1.442695, %v313_v3  ;;  %v317_v6 = vmul.f32 1.442695, %v314_v4 }
 0x129   :  { %552 = vpow2.f32 %v315_v5 }
 0x12a   :  { %554 = vpow2.f32 %v317_v6 }
 0x133   :  { %v553_v7 = vpop.eup %552 }
 0x134   :  { %v555_v8 = vpop.eup %554  ;;  %v320_v9 = vsel %vm319_vm4, %v553_v7, 0.0 }
 0x135   :  { %v321_v10 = vsel %vm319_vm4, %v555_v8, 0.0 }
 0x136   :  { %v322_v11 = vadd.f32 %v321_v10, %v320_v9 }
 0x138   :  { %556 = vrcp.f32 %v322_v11 }
 0x142   :  { %v557_v12 = vpop.eup %556 }
 0x143   :  { %v324_v13 = vmul.f32 %v557_v12, %v553_v7  ;;  %v325_v14 = vmul.f32 %v557_v12, %v555_v8 }
 0x145   :  { %326 = vst [vmem:[#allocation3] sm:$0x1] %v324_v13  ;;  %327 = vst [vmem:[#allocation3 + $0x1] sm:$0x1] %v325_v14 }
 0x146   :  { %569 = shalt.err (!%p566_p4)
}
 0x147   :  { %s570_s24 = scalar_lea.hbm %s775_s2, 32 }
 0x148   :  { %p571_p5 = scmp.ne.s32.totalorder %s775_s2, %s570_s24  ;;  %p574_p6 = scmp.lt.u32.totalorder %s570_s24, %s775_s2 }
 0x14a   :  { %p576_p7 = pnand %p574_p6, %p571_p5 }
 0x14c   :  { %579 = shalt.err (!%p576_p7)
}
 0x14d   :  { %s586_s29 = smov 16   ;;  %s587_s30 = smov 1  }
 0x14e   :  { %339 = dma.vmem_to_hbm [thread:$0]  %s334_s1, 32, %s775_s2, [#allocation4], %s586_s29, %s586_s29, %s587_s30  }
 0x14f   :  { %580 = dma.done.wait [#allocation4], 32  }
 0x150   :  { %581 = vsyncadd [#allocation4], 4294967264 }
 0x151   :  { %343 = vsyncpa [#allocation4], 1 }

</bundles_post_ra>
